<compile_context>
chip_gen: v7x
topology: tpu7x:2x2x1
jax: 0.10.0
libtpu: 0.0.40
codegen_flags: <defaults>
</compile_context>

<pallas_src>
import functools

import jax
import jax.numpy as jnp
from jax.experimental import pallas as pl
from jax.experimental.pallas import tpu as pltpu

ALPHA = 0.3
BETA = 0.3


def _round_up(x, m):
    return (x + m - 1) // m * m


def _biased_ce_kernel(feat_ref, logits_ref, target_ref, out_ref,
                      sum_ref, sumsq_ref, *, f_actual, tile_f, ragged,
                      alpha, beta):
    # feat_ref:   (B, TILE_F)  feature storage dtype — streamed block
    # logits_ref: (B, C)       — resident (same block every step)
    # target_ref: (B, 1) int32 — resident
    # out_ref:    (1, 1) f32   — SMEM scalar
    # sum_ref / sumsq_ref: (B, TILE_F) f32 lane-parallel accumulators
    k = pl.program_id(0)
    nk = pl.num_programs(0)
    B = feat_ref.shape[0]

    @pl.when(k == 0)
    def _():
        sum_ref[...] = jnp.zeros_like(sum_ref)
        sumsq_ref[...] = jnp.zeros_like(sumsq_ref)

    # Steady state: pure VALU elementwise accumulation (DMA stays the bottleneck).
    feat = feat_ref[...].astype(jnp.float32)                   # (B, TILE_F)
    if ragged:
        # Mask lanes past the true feature length.  Only the last block is
        # actually ragged, but the select is ~free under the DMA.
        col = jax.lax.broadcasted_iota(jnp.int32, feat.shape, 1)
        feat = jnp.where(k * tile_f + col < f_actual, feat, 0.0)
    sum_ref[...] += feat
    sumsq_ref[...] += feat * feat

    @pl.when(k == nk - 1)
    def _():
        # Single cross-lane reduce of the lane-parallel partials.
        s = jnp.sum(sum_ref[...], axis=1, keepdims=True)       # (B, 1)
        ss = jnp.sum(sumsq_ref[...], axis=1, keepdims=True)    # (B, 1)
        # Unbiased variance (torch.var default correction=1), using the true F.
        # NOTE: one-pass sum/sumsq in f32 can lose precision when |mean| >> std
        # and F is very large; lane-parallel partials mitigate the sum part.
        var = (ss - s * s * (1.0 / f_actual)) / jnp.float32(f_actual - 1)

        # Min-max normalize across the batch (no eps — exactly like torch).
        vmax = jnp.max(var)
        vmin = jnp.min(var)
        var_norm = (var - vmin) / (vmax - vmin)                # (B, 1)

        # Per-sample cross entropy with logits (stable log-softmax).
        logits = logits_ref[...].astype(jnp.float32)           # (B, C)
        C = logits.shape[1]
        lmax = jnp.max(logits, axis=1, keepdims=True)
        shifted = logits - lmax
        lse = jnp.log(jnp.sum(jnp.exp(shifted), axis=1, keepdims=True))
        log_probs = shifted - lse                              # (B, C)

        tgt = target_ref[...]                                  # (B, 1) int32
        cls = jax.lax.broadcasted_iota(jnp.int32, (B, C), 1)
        onehot = (cls == tgt).astype(jnp.float32)
        ce = -jnp.sum(log_probs * onehot, axis=1, keepdims=True)   # (B, 1)

        weight = jnp.exp(var_norm * alpha) - beta
        out_ref[0, 0] = jnp.sum(ce * weight) * (1.0 / B)


def biased_loss_cross_entropy(features, output, target,
                              alpha=ALPHA, beta=BETA, tile_f=None):
    """features: (B, ...) activations; output: (B, num_classes) logits;
    target: (B,) int class indices.  Returns scalar float32 loss."""
    B = features.shape[0]
    # torch clones + detaches features before the variance weight.
    feat2d = jax.lax.stop_gradient(features).reshape(B, -1)
    f_actual = feat2d.shape[1]
    num_classes = output.shape[1]
    target2d = target.astype(jnp.int32).reshape(B, 1)

    itemsize = jnp.dtype(feat2d.dtype).itemsize
    out_itemsize = jnp.dtype(output.dtype).itemsize
    b_pad = _round_up(B, 8)
    f_pad128 = _round_up(f_actual, 128)

    # Generation-aware VMEM ceiling (v7x has only 64 MiB per TensorCore).
    try:
        vmem_cap = int(getattr(pltpu.get_tpu_info(), "vmem_capacity_bytes",
                               64 << 20))
    except Exception:
        vmem_cap = 64 << 20               # conservative (v7x) fallback
    vmem_ceiling = min(int(vmem_cap * 0.85), 100 << 20)

    if tile_f is None:
        # Byte-budgeted feature block: double-buffered storage-dtype tile plus
        # the two f32 accumulators must fit inside ~stream_budget bytes.
        bytes_per_col = b_pad * (2 * itemsize + 2 * 4)
        stream_budget = min(8 << 20, vmem_ceiling // 3)
        tile_f = max(128, stream_budget // bytes_per_col // 128 * 128)
    tile_f = max(128, _round_up(min(tile_f, f_pad128), 128))
    num_k = pl.cdiv(f_actual, tile_f)
    ragged = (f_actual % tile_f) != 0

    # VMEM budget: double-buffered feature blocks + f32 accumulators +
    # resident logits/target (double-buffered) + slack; clamped to the ceiling.
    vmem_need = (2 * b_pad * tile_f * itemsize
                 + 2 * b_pad * tile_f * 4
                 + 2 * b_pad * _round_up(num_classes, 128) * out_itemsize
                 + 2 * b_pad * 128 * 4)
    vmem_limit = int(min(max(2 * vmem_need, 16 << 20), vmem_ceiling))

    kernel = functools.partial(_biased_ce_kernel, f_actual=f_actual,
                               tile_f=tile_f, ragged=ragged,
                               alpha=alpha, beta=beta)

    out = pl.pallas_call(
        kernel,
        out_shape=jax.ShapeDtypeStruct((1, 1), jnp.float32),
        grid=(num_k,),
        in_specs=[
            pl.BlockSpec((B, tile_f), lambda k: (0, k)),        # streamed
            pl.BlockSpec((B, num_classes), lambda k: (0, 0)),   # fetched once
            pl.BlockSpec((B, 1), lambda k: (0, 0)),             # fetched once
        ],
        out_specs=pl.BlockSpec(memory_space=pltpu.MemorySpace.SMEM),
        scratch_shapes=[
            pltpu.VMEM((B, tile_f), jnp.float32),   # lane-parallel sum
            pltpu.VMEM((B, tile_f), jnp.float32),   # lane-parallel sum of squares
        ],
        compiler_params=pltpu.CompilerParams(
            dimension_semantics=("arbitrary",),
            vmem_limit_bytes=vmem_limit,
        ),
    )(feat2d, output, target2d)
    return out[0, 0]


def _reference(features, output, target, alpha=ALPHA, beta=BETA):
    B = features.shape[0]
    feat = features.reshape(B, -1).astype(jnp.float32)
    var = jnp.var(feat, axis=1, ddof=1)
    var_norm = (var - var.min()) / (var.max() - var.min())
    logp = jax.nn.log_softmax(output.astype(jnp.float32), axis=-1)
    ce = -jnp.take_along_axis(logp, target[:, None].astype(jnp.int32), axis=1)[:, 0]
    return jnp.mean(ce * (jnp.exp(var_norm * alpha) - beta))


if __name__ == "__main__":
    key = jax.random.PRNGKey(0)
    k1, k2, k3, k4 = jax.random.split(key, 4)

    B, C, H, W = 2, 4, 16, 16     # features NCHW → F = 1024
    NUM_CLASSES = 10

    features = jax.random.normal(k1, (B, C, H, W), dtype=jnp.float32)
    logits = jax.random.normal(k2, (B, NUM_CLASSES), dtype=jnp.float32)
    target = jax.random.randint(k3, (B,), 0, NUM_CLASSES, dtype=jnp.int32)

    # Default byte-budgeted tiling (single full block here).
    loss = biased_loss_cross_entropy(features, logits, target)
    jax.block_until_ready(loss)
    ref = _reference(features, logits, target)
    assert jnp.allclose(loss, ref, atol=1e-5, rtol=1e-5), (loss, ref)

    # Multi-step grid with a ragged last tile (1024 = 2*384 + 256 valid lanes).
    loss2 = biased_loss_cross_entropy(features, logits, target, tile_f=384)
    jax.block_until_ready(loss2)
    assert jnp.allclose(loss2, ref, atol=1e-5, rtol=1e-5), (loss2, ref)

    # Feature length that is not a multiple of 128 (F = 300), single ragged block.
    features3 = jax.random.normal(k4, (B, 3, 10, 10), dtype=jnp.float32)
    loss3 = biased_loss_cross_entropy(features3, logits, target)
    jax.block_until_ready(loss3)
    ref3 = _reference(features3, logits, target)
    assert jnp.allclose(loss3, ref3, atol=1e-5, rtol=1e-5), (loss3, ref3)

    print("KERNEL_OK")
</pallas_src>

<mosaic_0001>
module attributes {stable_mosaic.version = 11 : i64} {
  func.func @_biased_ce_kernel(%arg0: i32, %arg1: memref<2x1024xf32, #tpu.memory_space<vmem>>, %arg2: memref<2x10xf32, #tpu.memory_space<vmem>>, %arg3: memref<2x1xi32, #tpu.memory_space<vmem>>, %arg4: memref<1x1xf32, #tpu.memory_space<smem>>, %arg5: memref<2x1024xf32, #tpu.memory_space<vmem>>, %arg6: memref<2x1024xf32, #tpu.memory_space<vmem>>) attributes {dimension_semantics = [#tpu.dimension_semantics<arbitrary>], iteration_bounds = array<i64: 1>, scalar_prefetch = 0 : i64, scratch_operands = 2 : i64, tpu.core_type = #tpu.core_type<tc>, window_params = [{transform_indices = @transform_0, window_bounds = array<i64: 2, 1024>}, {pipeline_mode = #tpu.pipeline_mode<synchronous>, transform_indices = @transform_1, window_bounds = array<i64: 2, 10>}, {pipeline_mode = #tpu.pipeline_mode<synchronous>, transform_indices = @transform_2, window_bounds = array<i64: 2, 1>}, {transform_indices = @transform_3, window_bounds = array<i64: 1, 1>}]} {
    %c0_i32 = arith.constant 0 : i32
    %0 = arith.cmpi eq, %arg0, %c0_i32 : i32
    %1 = arith.extui %0 : i1 to i32
    %c0_i32_0 = arith.constant 0 : i32
    %2 = arith.cmpi ne, %1, %c0_i32_0 : i32
    scf.if %2 {
      %cst = arith.constant 0.000000e+00 : f32
      %14 = vector.broadcast %cst : f32 to vector<2x1024xf32>
      %c0_12 = arith.constant 0 : index
      %c0_13 = arith.constant 0 : index
      %15 = vector.load %arg5[%c0_12, %c0_13] : memref<2x1024xf32, #tpu.memory_space<vmem>>, vector<2x1024xf32>
      tpu.vector_store %arg5[%c0_12, %c0_13], %14 {strides = array<i32>} : memref<2x1024xf32, #tpu.memory_space<vmem>>, vector<2x1024xf32>,
      %cst_14 = arith.constant 0.000000e+00 : f32
      %16 = vector.broadcast %cst_14 : f32 to vector<2x1024xf32>
      %c0_15 = arith.constant 0 : index
      %c0_16 = arith.constant 0 : index
      %17 = vector.load %arg6[%c0_15, %c0_16] : memref<2x1024xf32, #tpu.memory_space<vmem>>, vector<2x1024xf32>
      tpu.vector_store %arg6[%c0_15, %c0_16], %16 {strides = array<i32>} : memref<2x1024xf32, #tpu.memory_space<vmem>>, vector<2x1024xf32>,
    } else {
    }
    %c0 = arith.constant 0 : index
    %c0_1 = arith.constant 0 : index
    %3 = vector.load %arg1[%c0, %c0_1] : memref<2x1024xf32, #tpu.memory_space<vmem>>, vector<2x1024xf32>
    %c0_2 = arith.constant 0 : index
    %c0_3 = arith.constant 0 : index
    %4 = vector.load %arg5[%c0_2, %c0_3] : memref<2x1024xf32, #tpu.memory_space<vmem>>, vector<2x1024xf32>
    %5 = arith.addf %4, %3 : vector<2x1024xf32>
    %c0_4 = arith.constant 0 : index
    %c0_5 = arith.constant 0 : index
    %6 = vector.load %arg5[%c0_4, %c0_5] : memref<2x1024xf32, #tpu.memory_space<vmem>>, vector<2x1024xf32>
    tpu.vector_store %arg5[%c0_4, %c0_5], %5 {strides = array<i32>} : memref<2x1024xf32, #tpu.memory_space<vmem>>, vector<2x1024xf32>,
    %c0_6 = arith.constant 0 : index
    %c0_7 = arith.constant 0 : index
    %7 = vector.load %arg6[%c0_6, %c0_7] : memref<2x1024xf32, #tpu.memory_space<vmem>>, vector<2x1024xf32>
    %8 = arith.mulf %3, %3 : vector<2x1024xf32>
    %9 = arith.addf %7, %8 : vector<2x1024xf32>
    %c0_8 = arith.constant 0 : index
    %c0_9 = arith.constant 0 : index
    %10 = vector.load %arg6[%c0_8, %c0_9] : memref<2x1024xf32, #tpu.memory_space<vmem>>, vector<2x1024xf32>
    tpu.vector_store %arg6[%c0_8, %c0_9], %9 {strides = array<i32>} : memref<2x1024xf32, #tpu.memory_space<vmem>>, vector<2x1024xf32>,
    %c0_i32_10 = arith.constant 0 : i32
    %11 = arith.cmpi eq, %arg0, %c0_i32_10 : i32
    %12 = arith.extui %11 : i1 to i32
    %c0_i32_11 = arith.constant 0 : i32
    %13 = arith.cmpi ne, %12, %c0_i32_11 : i32
    scf.if %13 {
      %c0_12 = arith.constant 0 : index
      %c0_13 = arith.constant 0 : index
      %14 = vector.load %arg5[%c0_12, %c0_13] : memref<2x1024xf32, #tpu.memory_space<vmem>>, vector<2x1024xf32>
      %cst = arith.constant dense<0.000000e+00> : vector<2xf32>
      %15 = vector.multi_reduction <add>, %14, %cst [1] : vector<2x1024xf32> to vector<2xf32>
      %16 = vector.shape_cast %15 : vector<2xf32> to vector<2x1xf32>
      %c0_14 = arith.constant 0 : index
      %c0_15 = arith.constant 0 : index
      %17 = vector.load %arg6[%c0_14, %c0_15] : memref<2x1024xf32, #tpu.memory_space<vmem>>, vector<2x1024xf32>
      %cst_16 = arith.constant dense<0.000000e+00> : vector<2xf32>
      %18 = vector.multi_reduction <add>, %17, %cst_16 [1] : vector<2x1024xf32> to vector<2xf32>
      %19 = vector.shape_cast %18 : vector<2xf32> to vector<2x1xf32>
      %20 = arith.mulf %16, %16 : vector<2x1xf32>
      %cst_17 = arith.constant 9.765625E-4 : f32
      %21 = vector.broadcast %cst_17 : f32 to vector<2x1xf32>
      %22 = arith.mulf %20, %21 : vector<2x1xf32>
      %23 = arith.subf %19, %22 : vector<2x1xf32>
      %cst_18 = arith.constant 1.023000e+03 : f32
      %24 = vector.broadcast %cst_18 : f32 to vector<2x1xf32>
      %25 = arith.divf %23, %24 : vector<2x1xf32>
      %26 = vector.shape_cast %25 : vector<2x1xf32> to vector<1x2x1xf32>
      %cst_19 = arith.constant dense<0xFF800000> : vector<1xf32>
      %27 = vector.multi_reduction <maximumf>, %26, %cst_19 [1, 2] : vector<1x2x1xf32> to vector<1xf32>
      %28 = vector.shape_cast %27 : vector<1xf32> to vector<1x1x1xf32>
      %29 = vector.extract %28[0, 0, 0] : f32 from vector<1x1x1xf32>
      %30 = vector.shape_cast %25 : vector<2x1xf32> to vector<1x2x1xf32>
      %cst_20 = arith.constant dense<0x7F800000> : vector<1xf32>
      %31 = vector.multi_reduction <minimumf>, %30, %cst_20 [1, 2] : vector<1x2x1xf32> to vector<1xf32>
      %32 = vector.shape_cast %31 : vector<1xf32> to vector<1x1x1xf32>
      %33 = vector.extract %32[0, 0, 0] : f32 from vector<1x1x1xf32>
      %34 = vector.broadcast %33 : f32 to vector<2x1xf32>
      %35 = arith.subf %25, %34 : vector<2x1xf32>
      %36 = arith.subf %29, %33 : f32
      %37 = vector.broadcast %36 : f32 to vector<2x1xf32>
      %38 = arith.divf %35, %37 : vector<2x1xf32>
      %c0_21 = arith.constant 0 : index
      %c0_22 = arith.constant 0 : index
      %39 = vector.load %arg2[%c0_21, %c0_22] : memref<2x10xf32, #tpu.memory_space<vmem>>, vector<2x10xf32>
      %cst_23 = arith.constant dense<0xFF800000> : vector<2xf32>
      %40 = vector.multi_reduction <maximumf>, %39, %cst_23 [1] : vector<2x10xf32> to vector<2xf32>
      %41 = vector.shape_cast %40 : vector<2xf32> to vector<2x1xf32>
      %42 = vector.broadcast %41 : vector<2x1xf32> to vector<2x10xf32>
      %43 = arith.subf %39, %42 : vector<2x10xf32>
      %44 = math.exp %43 : vector<2x10xf32>
      %cst_24 = arith.constant dense<0.000000e+00> : vector<2xf32>
      %45 = vector.multi_reduction <add>, %44, %cst_24 [1] : vector<2x10xf32> to vector<2xf32>
      %46 = vector.shape_cast %45 : vector<2xf32> to vector<2x1xf32>
      %47 = math.log %46 : vector<2x1xf32>
      %48 = vector.broadcast %47 : vector<2x1xf32> to vector<2x10xf32>
      %49 = arith.subf %43, %48 : vector<2x10xf32>
      %c0_25 = arith.constant 0 : index
      %c0_26 = arith.constant 0 : index
      %50 = vector.load %arg3[%c0_25, %c0_26] : memref<2x1xi32, #tpu.memory_space<vmem>>, vector<2x1xi32>
      %51 = tpu.iota {dimensions = array<i32: 1>} : vector<2x10xi32>
      %52 = vector.broadcast %50 : vector<2x1xi32> to vector<2x10xi32>
      %53 = arith.cmpi eq, %51, %52 : vector<2x10xi32>
      %54 = arith.extui %53 : vector<2x10xi1> to vector<2x10xi32>
      %55 = arith.sitofp %54 : vector<2x10xi32> to vector<2x10xf32>
      %56 = arith.mulf %49, %55 : vector<2x10xf32>
      %cst_27 = arith.constant dense<0.000000e+00> : vector<2xf32>
      %57 = vector.multi_reduction <add>, %56, %cst_27 [1] : vector<2x10xf32> to vector<2xf32>
      %58 = vector.shape_cast %57 : vector<2xf32> to vector<2x1xf32>
      %cst_28 = arith.constant 0.000000e+00 : f32
      %59 = vector.broadcast %cst_28 : f32 to vector<2x1xf32>
      %60 = arith.subf %59, %58 : vector<2x1xf32>
      %cst_29 = arith.constant 3.000000e-01 : f32
      %61 = vector.broadcast %cst_29 : f32 to vector<2x1xf32>
      %62 = arith.mulf %38, %61 : vector<2x1xf32>
      %63 = math.exp %62 : vector<2x1xf32>
      %cst_30 = arith.constant 3.000000e-01 : f32
      %64 = vector.broadcast %cst_30 : f32 to vector<2x1xf32>
      %65 = arith.subf %63, %64 : vector<2x1xf32>
      %66 = arith.mulf %60, %65 : vector<2x1xf32>
      %67 = vector.shape_cast %66 : vector<2x1xf32> to vector<1x2x1xf32>
      %cst_31 = arith.constant dense<0.000000e+00> : vector<1xf32>
      %68 = vector.multi_reduction <add>, %67, %cst_31 [1, 2] : vector<1x2x1xf32> to vector<1xf32>
      %69 = vector.shape_cast %68 : vector<1xf32> to vector<1x1x1xf32>
      %70 = vector.extract %69[0, 0, 0] : f32 from vector<1x1x1xf32>
      %cst_32 = arith.constant 5.000000e-01 : f32
      %71 = arith.mulf %70, %cst_32 : f32
      %c0_33 = arith.constant 0 : index
      %c0_34 = arith.constant 0 : index
      %72 = memref.load %arg4[%c0_33, %c0_34] : memref<1x1xf32, #tpu.memory_space<smem>>
      memref.store %71, %arg4[%c0_33, %c0_34] : memref<1x1xf32, #tpu.memory_space<smem>>
    } else {
    }
    return
  }
  func.func @transform_0(%arg0: i32) -> (i32, i32) {
    %c0_i32 = arith.constant 0 : i32
    %c0_i32_0 = arith.constant 0 : i32
    return %c0_i32, %arg0 : i32, i32
  }
  func.func @transform_1(%arg0: i32) -> (i32, i32) {
    %c0_i32 = arith.constant 0 : i32
    %c0_i32_0 = arith.constant 0 : i32
    %c0_i32_1 = arith.constant 0 : i32
    return %c0_i32, %c0_i32_0 : i32, i32
  }
  func.func @transform_2(%arg0: i32) -> (i32, i32) {
    %c0_i32 = arith.constant 0 : i32
    %c0_i32_0 = arith.constant 0 : i32
    %c0_i32_1 = arith.constant 0 : i32
    return %c0_i32, %c0_i32_0 : i32, i32
  }
  func.func @transform_3(%arg0: i32) -> (i32, i32) {
    %c0_i32 = arith.constant 0 : i32
    %c0_i32_0 = arith.constant 0 : i32
    %c0_i32_1 = arith.constant 0 : i32
    return %c0_i32, %c0_i32_0 : i32, i32
  }
}

</mosaic_0001>

<bundles_post_ra>
// kernel: tpu_custom_call.1
= control target key start
LH: loop header
LB: loop body
LE: loop exit
PB: predicated region body
PF: predicated region fallthrough
CT: control target
= control target key end

     0   :  { %8 = vsyncpa [#allocation5], 0  ;;  %s411_s0 = inlined_call_operand.hbm [shape: f32[2,1024], index: 0, kind: input, shape index: {}]   ;;  %s412_s1 = inlined_call_operand.vmem [shape: f32[2,10], index: 1, kind: input, shape index: {}]   ;;  %s413_s2 = inlined_call_operand.vmem [shape: s32[2,1], index: 2, kind: input, shape index: {}]   ;;  %s414_s3 = inlined_call_operand.hbm [shape: f32[1,1], index: 3, kind: output, shape index: {}]  }
   0x1   :  { %9 = vsyncpa [#allocation6], 0  ;;  %s329_s12 = smov [#allocation4]   ;;  %s293_s16 = scalar_lea.hbm %s411_s0, 256 }
   0x2   :  { %s16_s13 = sshll.u32 %s329_s12, 4  ;;  %p294_p0 = scmp.ne.s32.totalorder %s411_s0, %s293_s16  ;;  %s17_s13 = int_to_ptr.vmem [resolvable:$true] %s16_s13 }
   0x3   :  { %p297_p1 = scmp.lt.u32.totalorder %s293_s16, %s411_s0 }
   0x5   :  { %p299_p2 = pnand %p297_p1, %p294_p0 }
   0x7   :  { %302 = shalt.err (!%p299_p2)
}
   0x8   :  { %s303_s21 = scalar_lea.vmem %s17_s13, 256  ;;  %p308_p4 = scmp.lt.s32.totalorder %s17_s13, %s17_s13 }
   0x9   :  { %p304_p3 = scmp.ne.s32.totalorder %s17_s13, %s303_s21  ;;  %p309_p5 = scmp.lt.s32.totalorder %s303_s21, %s303_s21 }
   0xb   :  { %p310_p6 = por %p309_p5, %p308_p4 }
   0xd   :  { %p311_p7 = pnand %p310_p6, %p304_p3 }
   0xf   :  { %314 = shalt.err (!%p311_p7)
}
  0x10   :  { %19 = dma.hbm_to_vmem [thread:$0]  %s411_s0, 256, %s17_s13, [#allocation5]  }
  0x11   :  { %325 = dma.done.wait [#allocation5], 256  }
  0x12   :  { %326 = vsyncadd [#allocation5], 4294967040  ;;  %v62_v0 = vlaneseq  ;;  %v330_v1 = vmov 1983009808   ;;  %vm209_vm0 = vcmask 74752   ;;  %v35_v7 = vld [vmem:[#allocation4] sm:$0xff] }
  0x13   :  { %v60_v2 = vunpack.c.l.s4 %v330_v1  ;;  %v370_v6 = vld [vmem:[%s412_s1] sm:$0x3]  ;;  %v36_v8 = vld [vmem:[#allocation4 + $0x8] sm:$0xff]  ;;  %vm100_vm1 = vcmask 1041408   ;;  %v58_v10 = vcombine.high %v35_v7, %v35_v7  ;;  %v45_v13 = vmul.f32 %v35_v7, %v35_v7  ;;  %s315_s5 = scalar_lea.hbm %s414_s3, 16 }
  0x14   :  { %v63_v3 = vshrl.u32 %v62_v0, 7  ;;  %v210_v9 = vsel %vm209_vm0, %v370_v6, -inf  ;;  %v75_v12 = vcombine.high %v36_v8, %v36_v8  ;;  %v46_v18 = vmul.f32 %v36_v8, %v36_v8  ;;  %v222_v63 = vld [vmem:[%s413_s2] sm:$0x3]  ;;  %p316_p8 = scmp.ne.s32.totalorder %s414_s3, %s315_s5  ;;  %p319_p9 = scmp.lt.u32.totalorder %s315_s5, %s414_s3 }
  0x15   :  { %v61_v4 = vunpack.c.0.s8 %v60_v2  ;;  %211 = vmax.xlane.f32.xlu0 %v210_v9  ;;  %v122_v19 = vcombine.high %v45_v13, %v45_v13  ;;  %v331_v62 = vmov 0   ;;  %vm241_vm3 = vcmask 1024  }
  0x16   :  { %v139_v30 = vcombine.high %v46_v18, %v46_v18  ;;  %282 = vset.pattern.permute.xlu0 %v331_v62  ;;  %p321_p10 = pnand %p319_p9, %p316_p8 }
  0x17   :  { %v64_v5 = vsub.s32 %v61_v4, %v63_v3 }
  0x19   :  { %v65_v11 = vrot.slane %v35_v7, %v64_v5  ;;  %v72_v14 = vrot.slane %v58_v10, %v64_v5  ;;  %v82_v16 = vrot.slane %v36_v8, %v64_v5  ;;  %v129_v20 = vrot.slane %v45_v13, %v64_v5 }
  0x1a   :  { %v89_v24 = vrot.slane %v75_v12, %v64_v5  ;;  %v136_v26 = vrot.slane %v122_v19, %v64_v5  ;;  %v146_v33 = vrot.slane %v46_v18, %v64_v5  ;;  %v153_v42 = vrot.slane %v139_v30, %v64_v5 }
  0x1b   :  { %v73_v15 = vcombine.high %v65_v11, %v65_v11  ;;  %v101_v17 = vsel %vm100_vm1, %v65_v11, 0.0  ;;  %v74_v21 = vcombine.high %v72_v14, %v72_v14  ;;  %v104_v23 = vsel %vm100_vm1, %v72_v14, 0.0 }
  0x1c   :  { %v90_v27 = vcombine.high %v82_v16, %v82_v16  ;;  %v137_v29 = vcombine.high %v129_v20, %v129_v20  ;;  %v138_v32 = vcombine.high %v136_v26, %v136_v26  ;;  %v164_v34 = vsel %vm100_vm1, %v129_v20, 0.0 }
  0x1d   :  { %v102_v22 = vsel %vm100_vm1, %v73_v15, 0.0  ;;  %v106_v28 = vsel %vm100_vm1, %v74_v21, 0.0  ;;  %v108_v35 = vsel %vm100_vm1, %v82_v16, 0.0  ;;  %v167_v37 = vsel %vm100_vm1, %v136_v26, 0.0 }
  0x1e   :  { %v103_v25 = vadd.f32 %v102_v22, %v101_v17  ;;  %v165_v36 = vsel %vm100_vm1, %v137_v29, 0.0  ;;  %v91_v38 = vcombine.high %v89_v24, %v89_v24  ;;  %v110_v41 = vsel %vm100_vm1, %v90_v27, 0.0 }
  0x1f   :  { %v166_v40 = vadd.f32 %v165_v36, %v164_v34  ;;  %v154_v43 = vcombine.high %v146_v33, %v146_v33  ;;  %v169_v44 = vsel %vm100_vm1, %v138_v32, 0.0  ;;  %v112_v47 = vsel %vm100_vm1, %v89_v24, 0.0 }
  0x20   :  { %v105_v31 = vadd.f32 %v104_v23, %v103_v25  ;;  %v171_v48 = vsel %vm100_vm1, %v146_v33, 0.0  ;;  %v114_v51 = vsel %vm100_vm1, %v91_v38, 0.0  ;;  %v155_v52 = vcombine.high %v153_v42, %v153_v42 }
  0x21   :  { %v168_v46 = vadd.f32 %v167_v37, %v166_v40  ;;  %v173_v53 = vsel %vm100_vm1, %v154_v43, 0.0  ;;  %v175_v56 = vsel %vm100_vm1, %v153_v42, 0.0  ;;  %v224_v27 = vand.u32 127, %v62_v0 }
  0x22   :  { %v107_v39 = vadd.f32 %v106_v28, %v105_v31  ;;  %v177_v59 = vsel %vm100_vm1, %v155_v52, 0.0  ;;  %v332_v31 = vmov 0.0  }
  0x23   :  { %v170_v50 = vadd.f32 %v169_v44, %v168_v46 }
  0x24   :  { %v109_v45 = vadd.f32 %v108_v35, %v107_v39 }
  0x25   :  { %v172_v55 = vadd.f32 %v171_v48, %v170_v50 }
  0x26   :  { %v111_v49 = vadd.f32 %v110_v41, %v109_v45 }
  0x27   :  { %v174_v58 = vadd.f32 %v173_v53, %v172_v55 }
  0x28   :  { %v113_v54 = vadd.f32 %v112_v47, %v111_v49 }
  0x29   :  { %v176_v60 = vadd.f32 %v175_v56, %v174_v58 }
  0x2a   :  { %v115_v57 = vadd.f32 %v114_v51, %v113_v54 }
  0x2b   :  { %v178_v61 = vadd.f32 %v177_v59, %v176_v60 }
  0x2c   :  { %116 = vadd.xlane.f32.xlu0 %v115_v57 }
  0x2d   :  { %179 = vadd.xlane.f32.xlu1 %v178_v61 }
  0x42   :  { %226 = vperm.xlu0 %282, %v222_v63  }
  0xa2   :  { %v212_v1 = vpop.xlane.xlu0 %211 }
  0xa3   :  { %v213_v2 = vsub.f32 %v370_v6, %v212_v1 }
  0xa5   :  { %v214_v3 = vmul.f32 1.442695, %v213_v2 }
  0xa7   :  { %285 = vpow2.f32 %v214_v3 }
  0xb1   :  { %v286_v4 = vpop.eup %285 }
  0xb2   :  { %v216_v5 = vsel %vm209_vm0, %v286_v4, 0.0 }
  0xb3   :  { %217 = vadd.xlane.f32.xlu1 %v216_v5 }
  0xb9   :  { %v117_v7 = vpop.xlane.xlu0 %116 }
  0xba   :  { %v181_v8 = vmul.f32 %v117_v7, %v117_v7  ;;  %v180_v10 = vpop.xlane.xlu1 %179 }
  0xbc   :  { %v182_v9 = vmul.f32 0.0009765625, %v181_v8 }
  0xbe   :  { %v183_v11 = vsub.f32 %v180_v10, %v182_v9 }
  0xc0   :  { %v185_v12 = vmul.f32 0.0009775171, %v183_v11 }
  0xc1   :  { %v227_v28 = vpop.permute.xlu0 %226 }
  0xc2   :  { %v194_v13 = vsel %vm100_vm1, %v185_v12, inf  ;;  %v186_v14 = vsel %vm100_vm1, %v185_v12, -inf  ;;  %vm228_vm2 = vcmp.eq.s32.totalorder %v224_v27, %v227_v28 }
  0xc3   :  { %v195_v15 = vrot.slane %v194_v13, 4  ;;  %v187_v16 = vrot.slane %v186_v14, 4  ;;  %v269_v32 = vsel %vm228_vm2, 1.0, %v332_v31 }
  0xc5   :  { %v188_v17 = vmax.f32 %v186_v14, %v187_v16  ;;  %v196_v6 = vmin.f32 %v194_v13, %v195_v15 }
  0xc7   :  { %v189_v18 = vrot.slane %v188_v17, 2  ;;  %v197_v19 = vrot.slane %v196_v6, 2 }
  0xc9   :  { %v190_v20 = vmax.f32 %v188_v17, %v189_v18  ;;  %v198_v21 = vmin.f32 %v196_v6, %v197_v19 }
  0xcb   :  { %v191_v22 = vrot.slane %v190_v20, 1  ;;  %v199_v23 = vrot.slane %v198_v21, 1 }
  0xcd   :  { %v192_v24 = vmax.f32 %v190_v20, %v191_v22  ;;  %v200_v25 = vmin.f32 %v198_v21, %v199_v23 }
  0xcf   :  { %271 = vpush %v192_v24 }
  0xd0   :  { %273 = vpush %v200_v25 }
 0x100   :  { %s272_s2 = spop %271 }
 0x101   :  { %s274_s26 = spop %273 }
 0x102   :  { %s204_s27 = ssub.f32 %s272_s2, %s274_s26  ;;  %v202_v37 = vstv %s274_s26 }
 0x103   :  { %v203_v38 = vsub.f32 %v185_v12, %v202_v37 }
 0x104   :  { %v205_v36 = vstv %s204_s27 }
 0x140   :  { %v218_v26 = vpop.xlane.xlu1 %217 }
 0x141   :  { %287 = vlog2.f32 %v218_v26 }
 0x142   :  { %289 = vrcp.f32 %v205_v36 }
 0x14b   :  { %v288_v29 = vpop.eup %287 }
 0x14c   :  { %v220_v30 = vmul.f32 0.6931472, %v288_v29  ;;  %v290_v39 = vpop.eup %289 }
 0x14d   :  { %v207_v0 = vmul.f32 %v290_v39, %v203_v38 }
 0x14e   :  { %v221_v33 = vsub.f32 %v213_v2, %v220_v30 }
 0x14f   :  { %v236_v40 = vmul.f32 0.3, %v207_v0 }
 0x150   :  { %v231_v34 = vmul.f32 %v269_v32, %v221_v33 }
 0x151   :  { %v237_v41 = vmul.f32 1.442695, %v236_v40 }
 0x152   :  { %v232_v35 = vsel %vm209_vm0, %v231_v34, 0.0 }
 0x153   :  { %233 = vadd.xlane.f32.xlu1 %v232_v35  ;;  %291 = vpow2.f32 %v237_v41 }
 0x15d   :  { %v292_v42 = vpop.eup %291 }
 0x15e   :  { %v270_v45 = vadd.f32 -0.3, %v292_v42 }
 0x1e0   :  { %v234_v43 = vpop.xlane.xlu1 %233 }
 0x1e1   :  { %v235_v44 = vsub.f32 0.0, %v234_v43 }
 0x1e3   :  { %v240_v46 = vmul.f32 %v270_v45, %v235_v44 }
 0x1e5   :  { %v242_v47 = vsel %vm241_vm3, %v240_v46, 0.0 }
 0x1e6   :  { %243 = vadd.xlane.f32.xlu1 %v242_v47 }
 0x273   :  { %v244_v48 = vpop.xlane.xlu1 %243 }
 0x274   :  { %v245_v49 = vrot.slane %v244_v48, 4 }
 0x276   :  { %v246_v50 = vadd.f32 %v245_v49, %v244_v48 }
 0x278   :  { %v247_v51 = vrot.slane %v246_v50, 2 }
 0x27a   :  { %v248_v52 = vadd.f32 %v247_v51, %v246_v50 }
 0x27c   :  { %v249_v53 = vrot.slane %v248_v52, 1 }
 0x27e   :  { %v250_v54 = vadd.f32 %v249_v53, %v248_v52 }
 0x280   :  { %275 = vpush %v250_v54 }
 0x2b1   :  { %s276_s28 = spop %275 }
 0x2b2   :  { %s252_s29 = smul.f32 0.5, %s276_s28 }
 0x2b4   :  { %254 = sst [smem:[#allocation7]] %s252_s29 }
 0x2b5   :  { %324 = shalt.err (!%p321_p10)
}
 0x2b6   :  { %s333_s10 = smov [#allocation7]  }
 0x2b7   :  { %262 = dma.smem_to_hbm %s333_s10, 16, %s414_s3, [#allocation6]  }
 0x2b8   :  { %327 = dma.done.wait [#allocation6], 16  }
 0x2b9   :  { %328 = vsyncadd [#allocation6], 4294967280 }
 0x2ba   :  { %266 = sfence }
 0x2bb   :  { %267 = vsyncpa [#allocation5], 1 }
 0x2bc   :  { %268 = vsyncpa [#allocation6], 1 }

</bundles_post_ra>
